<compile_context>
chip_gen: v6e
topology: v6e:2x2x1
jax: 0.10.0
libtpu: 0.0.40
codegen_flags: <defaults>
</compile_context>

<pallas_src>
import jax
import jax.numpy as jnp
from jax.experimental import pallas as pl
from jax.experimental.pallas import tpu as pltpu

STATE_DIM = 8
HIDDEN = 100
ACTION_N = 4

HIDDEN_PAD = 128   # lane-aligned hidden width (padded lanes are exactly zero)


def _cdiv(a, b):
    return (a + b - 1) // b


def _round_up(x, m):
    return ((x + m - 1) // m) * m


def cem_mlp_kernel(x_ref, w1_ref, b1_ref, w2_ref, b2_ref, o_ref):
    # x_ref:  (TB, STATE_DIM)
    # w1_ref: (STATE_DIM, HIDDEN_PAD), b1_ref: (1, HIDDEN_PAD)
    # w2_ref: (HIDDEN_PAD, ACTION_N),  b2_ref: (1, ACTION_N)
    # o_ref:  (TB, ACTION_N)
    x = x_ref[...]
    h = jnp.dot(x, w1_ref[...], preferred_element_type=jnp.float32) + b1_ref[...]
    h = jnp.maximum(h, 0.0)  # ReLU; padded hidden lanes stay exactly 0
    logits = jnp.dot(h, w2_ref[...], preferred_element_type=jnp.float32) + b2_ref[...]
    o_ref[...] = logits.astype(o_ref.dtype)


def prepare_params(w1, b1, w2, b2):
    """Pad weights once (outside the forward path) to lane-aligned hidden width.
    w1: (8,100), b1: (100,), w2: (100,4), b2: (4,) -> padded f32 arrays."""
    w1_p = jnp.zeros((STATE_DIM, HIDDEN_PAD), jnp.float32).at[:, :HIDDEN].set(w1)
    b1_p = jnp.zeros((1, HIDDEN_PAD), jnp.float32).at[:, :HIDDEN].set(
        b1.reshape(1, HIDDEN))
    w2_p = jnp.zeros((HIDDEN_PAD, ACTION_N), jnp.float32).at[:HIDDEN, :].set(w2)
    b2_p = jnp.asarray(b2, jnp.float32).reshape(1, ACTION_N)
    return w1_p, b1_p, w2_p, b2_p


def _choose_tile(B, tb):
    """Pick a batch tile so b_pad stays within one 8-row group of B and the grid
    has >= 2 steps when B > 8 (megacore on v7x; neutral elsewhere)."""
    if B <= 8:
        return 8
    n_steps = max(2, _cdiv(B, tb))
    return _round_up(_cdiv(B, n_steps), 8)


def cem_forward(x, w1_p, b1_p, w2_p, b2_p, *, tb=2048):
    """x: (B, STATE_DIM) f32, padded params from prepare_params()
    -> logits (B, ACTION_N) f32, identical math to nn.Linear/ReLU/nn.Linear."""
    B = x.shape[0]

    tile_b = _choose_tile(B, tb)
    b_pad = _round_up(B, tile_b)
    if b_pad != B:
        x = jnp.pad(x, ((0, b_pad - B), (0, 0)))

    grid = (b_pad // tile_b,)

    flops = 2 * b_pad * (STATE_DIM * HIDDEN_PAD + HIDDEN_PAD * ACTION_N)
    bytes_accessed = 4 * (
        b_pad * STATE_DIM                        # x in
        + STATE_DIM * HIDDEN_PAD + HIDDEN_PAD    # w1, b1
        + HIDDEN_PAD * ACTION_N + ACTION_N       # w2, b2
        + b_pad * ACTION_N                       # out
    )

    out = pl.pallas_call(
        cem_mlp_kernel,
        out_shape=jax.ShapeDtypeStruct((b_pad, ACTION_N), jnp.float32),
        grid_spec=pl.GridSpec(
            grid=grid,
            in_specs=[
                pl.BlockSpec((tile_b, STATE_DIM), lambda i: (i, 0)),
                pl.BlockSpec((STATE_DIM, HIDDEN_PAD), lambda i: (0, 0)),
                pl.BlockSpec((1, HIDDEN_PAD), lambda i: (0, 0)),
                pl.BlockSpec((HIDDEN_PAD, ACTION_N), lambda i: (0, 0)),
                pl.BlockSpec((1, ACTION_N), lambda i: (0, 0)),
            ],
            out_specs=pl.BlockSpec((tile_b, ACTION_N), lambda i: (i, 0)),
        ),
        compiler_params=pltpu.CompilerParams(
            dimension_semantics=("parallel",)),
        cost_estimate=pl.CostEstimate(
            flops=flops, transcendentals=0, bytes_accessed=bytes_accessed),
    )(x, w1_p, b1_p, w2_p, b2_p)

    return out[:B, :]


def init_params(key):
    """Deterministic synthetic init (shapes match nn.Linear(8,100), nn.Linear(100,4)).
    Weights are stored pre-transposed as [in_features, out_features] so the kernel
    computes x @ W + b, matching PyTorch's x @ W.T + b."""
    k1, k2, k3, k4 = jax.random.split(key, 4)
    lim1 = 1.0 / jnp.sqrt(jnp.float32(STATE_DIM))
    lim2 = 1.0 / jnp.sqrt(jnp.float32(HIDDEN))
    w1 = jax.random.uniform(k1, (STATE_DIM, HIDDEN), jnp.float32, -lim1, lim1)
    b1 = jax.random.uniform(k2, (HIDDEN,), jnp.float32, -lim1, lim1)
    w2 = jax.random.uniform(k3, (HIDDEN, ACTION_N), jnp.float32, -lim2, lim2)
    b2 = jax.random.uniform(k4, (ACTION_N,), jnp.float32, -lim2, lim2)
    return w1, b1, w2, b2


if __name__ == "__main__":
    key = jax.random.PRNGKey(0)
    kx, kx2, kp = jax.random.split(key, 3)
    w1, b1, w2, b2 = init_params(kp)
    w1_p, b1_p, w2_p, b2_p = prepare_params(w1, b1, w2, b2)  # padded once

    def ref_fwd(x):
        return jnp.maximum(x @ w1 + b1, 0.0) @ w2 + b2

    # Small batch (exercises batch padding to 8 rows, single-tile path).
    x_small = jax.random.normal(kx, (6, STATE_DIM), jnp.float32)
    logits_small = cem_forward(x_small, w1_p, b1_p, w2_p, b2_p)
    jax.block_until_ready(logits_small)
    assert logits_small.shape == (6, ACTION_N)
    assert jnp.allclose(logits_small, ref_fwd(x_small), atol=1e-5, rtol=1e-5)

    # Larger CEM-population batch (multi-step grid; tile chosen so padding is minimal).
    x_big = jax.random.normal(kx2, (600, STATE_DIM), jnp.float32)
    logits_big = cem_forward(x_big, w1_p, b1_p, w2_p, b2_p)
    jax.block_until_ready(logits_big)
    assert logits_big.shape == (600, ACTION_N)
    assert jnp.allclose(logits_big, ref_fwd(x_big), atol=1e-5, rtol=1e-5)

    # TODO(synk): get_action's softmax + epsilon-greedy numpy sampling and
    # update_policy's Adam/CrossEntropy training are host-side / training logic,
    # not part of the forward kernel.
    print("KERNEL_OK")
</pallas_src>

<mosaic_0001>
module attributes {stable_mosaic.version = 11 : i64} {
  func.func @cem_mlp_kernel(%arg0: i32, %arg1: memref<8x8xf32, #tpu.memory_space<vmem>>, %arg2: memref<8x128xf32, #tpu.memory_space<vmem>>, %arg3: memref<1x128xf32, #tpu.memory_space<vmem>>, %arg4: memref<128x4xf32, #tpu.memory_space<vmem>>, %arg5: memref<1x4xf32, #tpu.memory_space<vmem>>, %arg6: memref<8x4xf32, #tpu.memory_space<vmem>>) attributes {dimension_semantics = [#tpu.dimension_semantics<parallel>], iteration_bounds = array<i64: 1>, scalar_prefetch = 0 : i64, scratch_operands = 0 : i64, tpu.core_type = #tpu.core_type<tc>, window_params = [{transform_indices = @transform_0, window_bounds = array<i64: 8, 8>}, {pipeline_mode = #tpu.pipeline_mode<synchronous>, transform_indices = @transform_1, window_bounds = array<i64: 8, 128>}, {pipeline_mode = #tpu.pipeline_mode<synchronous>, transform_indices = @transform_2, window_bounds = array<i64: 1, 128>}, {pipeline_mode = #tpu.pipeline_mode<synchronous>, transform_indices = @transform_3, window_bounds = array<i64: 128, 4>}, {pipeline_mode = #tpu.pipeline_mode<synchronous>, transform_indices = @transform_4, window_bounds = array<i64: 1, 4>}, {transform_indices = @transform_5, window_bounds = array<i64: 8, 4>}]} {
    %c0 = arith.constant 0 : index
    %c0_0 = arith.constant 0 : index
    %0 = vector.load %arg1[%c0, %c0_0] : memref<8x8xf32, #tpu.memory_space<vmem>>, vector<8x8xf32>
    %c0_1 = arith.constant 0 : index
    %c0_2 = arith.constant 0 : index
    %1 = vector.load %arg2[%c0_1, %c0_2] : memref<8x128xf32, #tpu.memory_space<vmem>>, vector<8x128xf32>
    %cst = arith.constant dense<0.000000e+00> : vector<8x128xf32>
    %2 = tpu.matmul %0, %1, %cst {dimension_numbers = #tpu.dot_dimension_numbers<[1], [0], [0], [1], [0, 0, 1, 1], [], []>} : vector<8x8xf32>, vector<8x128xf32>, vector<8x128xf32> -> vector<8x128xf32>
    %c0_3 = arith.constant 0 : index
    %c0_4 = arith.constant 0 : index
    %3 = vector.load %arg3[%c0_3, %c0_4] : memref<1x128xf32, #tpu.memory_space<vmem>>, vector<1x128xf32>
    %4 = vector.broadcast %3 : vector<1x128xf32> to vector<8x128xf32>
    %5 = arith.addf %2, %4 : vector<8x128xf32>
    %cst_5 = arith.constant 0.000000e+00 : f32
    %6 = vector.broadcast %cst_5 : f32 to vector<8x128xf32>
    %7 = arith.maximumf %5, %6 : vector<8x128xf32>
    %c0_6 = arith.constant 0 : index
    %c0_7 = arith.constant 0 : index
    %8 = vector.load %arg4[%c0_6, %c0_7] : memref<128x4xf32, #tpu.memory_space<vmem>>, vector<128x4xf32>
    %cst_8 = arith.constant dense<0.000000e+00> : vector<8x4xf32>
    %9 = tpu.matmul %7, %8, %cst_8 {dimension_numbers = #tpu.dot_dimension_numbers<[1], [0], [0], [1], [0, 0, 1, 1], [], []>} : vector<8x128xf32>, vector<128x4xf32>, vector<8x4xf32> -> vector<8x4xf32>
    %c0_9 = arith.constant 0 : index
    %c0_10 = arith.constant 0 : index
    %10 = vector.load %arg5[%c0_9, %c0_10] : memref<1x4xf32, #tpu.memory_space<vmem>>, vector<1x4xf32>
    %11 = vector.broadcast %10 : vector<1x4xf32> to vector<8x4xf32>
    %12 = arith.addf %9, %11 : vector<8x4xf32>
    %c0_11 = arith.constant 0 : index
    %c0_12 = arith.constant 0 : index
    %13 = vector.load %arg6[%c0_11, %c0_12] : memref<8x4xf32, #tpu.memory_space<vmem>>, vector<8x4xf32>
    tpu.vector_store %arg6[%c0_11, %c0_12], %12 {strides = array<i32>} : memref<8x4xf32, #tpu.memory_space<vmem>>, vector<8x4xf32>,
    return
  }
  func.func @transform_0(%arg0: i32) -> (i32, i32) {
    %c0_i32 = arith.constant 0 : i32
    %c0_i32_0 = arith.constant 0 : i32
    return %arg0, %c0_i32 : i32, i32
  }
  func.func @transform_1(%arg0: i32) -> (i32, i32) {
    %c0_i32 = arith.constant 0 : i32
    %c0_i32_0 = arith.constant 0 : i32
    %c0_i32_1 = arith.constant 0 : i32
    return %c0_i32, %c0_i32_0 : i32, i32
  }
  func.func @transform_2(%arg0: i32) -> (i32, i32) {
    %c0_i32 = arith.constant 0 : i32
    %c0_i32_0 = arith.constant 0 : i32
    %c0_i32_1 = arith.constant 0 : i32
    return %c0_i32, %c0_i32_0 : i32, i32
  }
  func.func @transform_3(%arg0: i32) -> (i32, i32) {
    %c0_i32 = arith.constant 0 : i32
    %c0_i32_0 = arith.constant 0 : i32
    %c0_i32_1 = arith.constant 0 : i32
    return %c0_i32, %c0_i32_0 : i32, i32
  }
  func.func @transform_4(%arg0: i32) -> (i32, i32) {
    %c0_i32 = arith.constant 0 : i32
    %c0_i32_0 = arith.constant 0 : i32
    %c0_i32_1 = arith.constant 0 : i32
    return %c0_i32, %c0_i32_0 : i32, i32
  }
  func.func @transform_5(%arg0: i32) -> (i32, i32) {
    %c0_i32 = arith.constant 0 : i32
    %c0_i32_0 = arith.constant 0 : i32
    return %arg0, %c0_i32 : i32, i32
  }
}

</mosaic_0001>

<bundles_post_ra>
// kernel: tpu_custom_call.1
= control target key start
LH: loop header
LB: loop body
LE: loop exit
PB: predicated region body
PF: predicated region fallthrough
CT: control target
= control target key end

     0   :  { %vm29_vm0 = vcmask 64512   ;;  %v267_v0 = vmov 0.0   ;;  %vm268_vm1 = vmmov 0   ;;  %vm197_vm2 = vcmask 31744   ;;  %s362_s1 = inlined_call_operand.vmem [shape: f32[8,128], index: 1, kind: input, shape index: {}]   ;;  %s363_s0 = inlined_call_operand.vmem [shape: f32[8,8], index: 0, kind: input, shape index: {}]   ;;  %s364_s3 = inlined_call_operand.vmem [shape: f32[128,4], index: 3, kind: input, shape index: {}]   ;;  %s365_s2 = inlined_call_operand.vmem [shape: f32[1,128], index: 2, kind: input, shape index: {}]   ;;  %s366_s4 = inlined_call_operand.vmem [shape: f32[1,4], index: 4, kind: input, shape index: {}]   ;;  %s367_s5 = inlined_call_operand.vmem [shape: f32[8,4], index: 5, kind: output, shape index: {}]  }
   0x1   :  { %225 = vmatprep.subr.mxu0 %v267_v0  ;;  %v21_v1 = vld [vmem:[%s362_s1] sm:$0xff]  ;;  %227 = vmatprep.mubr.msk.f32.mxu0 %vm268_vm1, %v267_v0  ;;  %v119_v3 = vld [vmem:[%s364_s3 + $0x78] sm:$0xff]  ;;  %v118_v4 = vld [vmem:[%s364_s3 + $0x70] sm:$0xff] }
   0x2   :  { %v20_v2 = vld [vmem:[%s363_s0] sm:$0xff]  ;;  %226 = vmatpush3.msra.mxu0 %v21_v1  ;;  %230 = vmatprep.subr.mxu1 %v267_v0  ;;  %v117_v5 = vld [vmem:[%s364_s3 + $0x68] sm:$0xff]  ;;  %v115_v7 = vld [vmem:[%s364_s3 + $0x58] sm:$0xff] }
   0x3   :  { %228 = vmatmul.mubr.msk.f32.vlgmr.msra.gmra.mxu0 %vm29_vm0, %v20_v2  ;;  %231 = vmatpush3.msra.mxu1 %v119_v3  ;;  %v116_v6 = vld [vmem:[%s364_s3 + $0x60] sm:$0xff]  ;;  %v114_v8 = vld [vmem:[%s364_s3 + $0x50] sm:$0xff]  ;;  %v113_v9 = vld [vmem:[%s364_s3 + $0x48] sm:$0xff] }
   0x4   :  { %232 = vmatprep.subr.mxu1 %v267_v0  ;;  %262 = vmatprep.mubr.msk.f32.mxu1 %vm268_vm1, %v267_v0  ;;  %v112_v10 = vld [vmem:[%s364_s3 + $0x40] sm:$0xff]  ;;  %v111_v11 = vld [vmem:[%s364_s3 + $0x38] sm:$0xff]  ;;  %v110_v12 = vld [vmem:[%s364_s3 + $0x30] sm:$0xff] }
   0x5   :  { %233 = vmatpush3.msra.mxu1 %v118_v4  ;;  %v109_v13 = vld [vmem:[%s364_s3 + $0x28] sm:$0xff]  ;;  %v108_v14 = vld [vmem:[%s364_s3 + $0x20] sm:$0xff]  ;;  %v107_v15 = vld [vmem:[%s364_s3 + $0x18] sm:$0xff] }
   0x6   :  { %234 = vmatprep.subr.mxu1 %v267_v0  ;;  %v106_v16 = vld [vmem:[%s364_s3 + $0x10] sm:$0xff]  ;;  %v105_v17 = vld [vmem:[%s364_s3 + $0x8] sm:$0xff]  ;;  %v104_v18 = vld [vmem:[%s364_s3] sm:$0xff] }
   0x7   :  { %235 = vmatpush3.msra.mxu1 %v117_v5  ;;  %v203_v19 = vld [vmem:[%s365_s2] ss:$0 sm:$0xff] }
   0x8   :  { %236 = vmatprep.subr.mxu1 %v267_v0  ;;  %v205_v24 = vld [vmem:[%s366_s4] ss:$0 sm:$0xff] }
   0x9   :  { %237 = vmatpush3.msra.mxu1 %v116_v6 }
   0xa   :  { %238 = vmatprep.subr.mxu1 %v267_v0 }
   0xb   :  { %239 = vmatpush3.msra.mxu1 %v115_v7 }
   0xc   :  { %240 = vmatprep.subr.mxu1 %v267_v0 }
   0xd   :  { %241 = vmatpush3.msra.mxu1 %v114_v8 }
   0xe   :  { %242 = vmatprep.subr.mxu1 %v267_v0 }
   0xf   :  { %243 = vmatpush3.msra.mxu1 %v113_v9 }
  0x10   :  { %244 = vmatprep.subr.mxu1 %v267_v0 }
  0x11   :  { %245 = vmatpush3.msra.mxu1 %v112_v10 }
  0x12   :  { %246 = vmatprep.subr.mxu1 %v267_v0 }
  0x13   :  { %247 = vmatpush3.msra.mxu1 %v111_v11 }
  0x14   :  { %248 = vmatprep.subr.mxu1 %v267_v0 }
  0x15   :  { %249 = vmatpush3.msra.mxu1 %v110_v12 }
  0x16   :  { %250 = vmatprep.subr.mxu1 %v267_v0 }
  0x17   :  { %251 = vmatpush3.msra.mxu1 %v109_v13 }
  0x18   :  { %252 = vmatprep.subr.mxu1 %v267_v0 }
  0x19   :  { %253 = vmatpush3.msra.mxu1 %v108_v14 }
  0x1a   :  { %254 = vmatprep.subr.mxu1 %v267_v0 }
  0x1b   :  { %255 = vmatpush3.msra.mxu1 %v107_v15 }
  0x1c   :  { %256 = vmatprep.subr.mxu1 %v267_v0 }
  0x1d   :  { %257 = vmatpush3.msra.mxu1 %v106_v16 }
  0x1e   :  { %258 = vmatprep.subr.mxu1 %v267_v0 }
  0x1f   :  { %259 = vmatpush3.msra.mxu1 %v105_v17 }
  0x20   :  { %260 = vmatprep.subr.mxu1 %v267_v0 }
  0x21   :  { %261 = vmatpush3.msra.mxu1 %v104_v18 }
  0xc3   :  { %v99_v20 = vpop.f32.mrf.mxu0 }
  0xc4   :  { %v100_v21 = vadd.f32 %v203_v19, %v99_v20 }
  0xc5   :  { %v229_v22 = vpop.f32.mrf.mxu0 }
  0xc6   :  { %v103_v23 = vmax.f32 %v100_v21, 0.0 }
  0xc8   :  { %263 = vmatmul.mubr.f32.vlgmr.msra.gmra.mxu1 %v103_v23 }
 0x188   :  { %v193_v25 = vpop.f32.mrf.mxu1 }
 0x189   :  { %v194_v26 = vadd.f32 %v205_v24, %v193_v25 }
 0x18a   :  { %v264_v27 = vpop.f32.mrf.mxu1 }
 0x18b   :  { %198 = vst.msk [vmem:[%s367_s5] sm:$0xff] %vm197_vm2, %v194_v26 }

</bundles_post_ra>
